<compile_context>
chip_gen: v5e
topology: v5e:2x2
jax: 0.10.0
libtpu: 0.0.40
codegen_flags: <defaults>
</compile_context>

<pallas_src>
import functools

import jax
import jax.numpy as jnp
import numpy as np
from jax.experimental import pallas as pl
from jax.experimental.pallas import tpu as pltpu


def _scse_kernel(x_ref, w1t_ref, b1_ref, w2_ref, b2_ref, wsp_ref, bsp_ref,
                 o_ref, *, inv_hw):
    # x_ref: (1, C, HW) block for one batch element (input dtype)
    # w1t_ref: (C, Cs)  = conv_squeeze weight, transposed, f32
    # b1_ref : (1, Cs)  = conv_squeeze bias, f32
    # w2_ref : (C, Cs)  = conv_excite weight, f32
    # b2_ref : (C, 1)   = conv_excite bias, f32
    # wsp_ref: (C, 1)   = conv_squeeze2 (spatial squeeze) weight, f32
    # bsp_ref: (1, 1)   = conv_squeeze2 bias, f32
    x = x_ref[0]                                                      # (C, HW)

    # ---- channel squeeze & excite (cSE) -------------------------------------
    # Global average pool: f32-accumulated lane reduce, then * 1/(H*W).
    pooled = jnp.sum(x, axis=1, keepdims=True, dtype=jnp.float32) * inv_hw  # (C, 1)
    # squeeze: h[s] = relu(sum_c pooled[c] * w1[s, c] + b1[s])
    h = jnp.sum(pooled * w1t_ref[...], axis=0, keepdims=True) + b1_ref[...]  # (1, Cs)
    h = jnp.maximum(h, 0.0)
    # excite: ce[c] = sum_s w2[c, s] * h[s] + b2[c]
    ce = jnp.sum(w2_ref[...] * h, axis=1, keepdims=True) + b2_ref[...]       # (C, 1)
    gate_c = jax.nn.sigmoid(ce)                                              # (C, 1) f32

    # ---- spatial squeeze & excite (sSE) -------------------------------------
    # 1x1 conv C -> 1 per pixel: se[p] = sum_c wsp[c] * x[c, p] + bsp
    # (multiply promotes to f32 via the f32 weight; sublane reduce on XLU)
    se = jnp.sum(x * wsp_ref[...], axis=0, keepdims=True) + bsp_ref[...]     # (1, HW)
    gate_s = jax.nn.sigmoid(se)                                              # (1, HW) f32

    # ---- gated combine: x*(gc + gs); only the tiny gates are cast ----------
    gate = gate_c.astype(x.dtype) + gate_s.astype(x.dtype)                   # (C, HW)
    o_ref[0] = (x * gate).astype(o_ref.dtype)


def scse_forward(x, w1, b1, w2, b2, wsp, bsp):
    """scSE forward.

    x   : (B, C, H, W)
    w1  : (Cs, C)   conv_squeeze 1x1 weight (PyTorch (Cs, C, 1, 1) squeezed)
    b1  : (Cs,)     conv_squeeze bias
    w2  : (C, Cs)   conv_excite 1x1 weight
    b2  : (C,)      conv_excite bias
    wsp : (C,)      conv_squeeze2 1x1 weight (PyTorch (1, C, 1, 1) squeezed)
    bsp : ()        conv_squeeze2 bias (pass 0.0 if the conv has no bias)
    """
    B, C, H, W = x.shape
    HW = H * W
    Cs = w1.shape[0]

    # Lane-dense layout: last dim H*W (contiguous reshape, free).
    x2 = x.reshape(B, C, HW)

    w1t = jnp.asarray(w1, jnp.float32).T                # (C, Cs)
    b1r = jnp.asarray(b1, jnp.float32).reshape(1, Cs)   # (1, Cs)
    w2r = jnp.asarray(w2, jnp.float32)                  # (C, Cs)
    b2r = jnp.asarray(b2, jnp.float32).reshape(C, 1)    # (C, 1)
    wspr = jnp.asarray(wsp, jnp.float32).reshape(C, 1)  # (C, 1)
    bspr = jnp.asarray(bsp, jnp.float32).reshape(1, 1)  # (1, 1)

    # Scoped-VMEM budget: double-buffered in + out blocks plus headroom.
    block_bytes = C * HW * x.dtype.itemsize
    vmem_limit = int(min(max(4 * block_bytes + (2 << 20), 32 << 20), 64 << 20))

    kernel = functools.partial(_scse_kernel, inv_hw=1.0 / HW)

    out2 = pl.pallas_call(
        kernel,
        out_shape=jax.ShapeDtypeStruct((B, C, HW), x.dtype),
        grid_spec=pltpu.PrefetchScalarGridSpec(
            num_scalar_prefetch=0,
            grid=(B,),
            in_specs=[
                pl.BlockSpec((1, C, HW), lambda b: (b, 0, 0)),
                pl.BlockSpec((C, Cs), lambda b: (0, 0)),
                pl.BlockSpec((1, Cs), lambda b: (0, 0)),
                pl.BlockSpec((C, Cs), lambda b: (0, 0)),
                pl.BlockSpec((C, 1), lambda b: (0, 0)),
                pl.BlockSpec((C, 1), lambda b: (0, 0)),
                pl.BlockSpec((1, 1), lambda b: (0, 0)),
            ],
            out_specs=pl.BlockSpec((1, C, HW), lambda b: (b, 0, 0)),
        ),
        compiler_params=pltpu.CompilerParams(
            dimension_semantics=("parallel",),
            vmem_limit_bytes=vmem_limit,
        ),
    )(x2, w1t, b1r, w2r, b2r, wspr, bspr)

    return out2.reshape(B, C, H, W)


def scse_reference(x, w1, b1, w2, b2, wsp, bsp):
    """Pure-JAX reference matching the PyTorch SCSqueezeAndExcite forward."""
    pooled = jnp.mean(x.astype(jnp.float32), axis=(2, 3))          # (B, C)
    h = jnp.maximum(pooled @ jnp.asarray(w1, jnp.float32).T + b1, 0.0)   # (B, Cs)
    ce = h @ jnp.asarray(w2, jnp.float32).T + b2                   # (B, C)
    gate_c = jax.nn.sigmoid(ce)[:, :, None, None]                  # (B, C, 1, 1)
    se = jnp.einsum("bchw,c->bhw", x.astype(jnp.float32),
                    jnp.asarray(wsp, jnp.float32)) + bsp           # (B, H, W)
    gate_s = jax.nn.sigmoid(se)[:, None, :, :]                     # (B, 1, H, W)
    xf = x.astype(jnp.float32)
    return (xf * gate_c + xf * gate_s).astype(x.dtype)


if __name__ == "__main__":
    # Module config: in_channels=4, squeeze_ratio=0.25 -> squeeze_channels = 2
    in_channels = 4
    squeeze_ratio = 0.25
    squeeze_channels = max(round(in_channels * squeeze_ratio), 2)

    key = jax.random.PRNGKey(0)
    ks = jax.random.split(key, 7)
    x = jax.random.normal(ks[0], (2, in_channels, 16, 16), dtype=jnp.float32)
    # Deterministic synthetic 1x1-conv parameters (PyTorch shapes, squeezed).
    w1 = jax.random.normal(ks[1], (squeeze_channels, in_channels), jnp.float32) * 0.5
    b1 = jax.random.normal(ks[2], (squeeze_channels,), jnp.float32) * 0.1
    w2 = jax.random.normal(ks[3], (in_channels, squeeze_channels), jnp.float32) * 0.5
    b2 = jax.random.normal(ks[4], (in_channels,), jnp.float32) * 0.1
    wsp = jax.random.normal(ks[5], (in_channels,), jnp.float32) * 0.5
    bsp = jax.random.normal(ks[6], (), jnp.float32) * 0.1

    out = scse_forward(x, w1, b1, w2, b2, wsp, bsp)
    out = jax.block_until_ready(out)

    ref = scse_reference(x, w1, b1, w2, b2, wsp, bsp)
    np.testing.assert_allclose(np.asarray(out), np.asarray(ref), rtol=1e-5, atol=1e-5)

    print("KERNEL_OK")
</pallas_src>

<mosaic_0001>
module attributes {stable_mosaic.version = 11 : i64} {
  func.func @_scse_kernel(%arg0: i32, %arg1: memref<1x4x256xf32, #tpu.memory_space<vmem>>, %arg2: memref<4x2xf32, #tpu.memory_space<vmem>>, %arg3: memref<1x2xf32, #tpu.memory_space<vmem>>, %arg4: memref<4x2xf32, #tpu.memory_space<vmem>>, %arg5: memref<4x1xf32, #tpu.memory_space<vmem>>, %arg6: memref<4x1xf32, #tpu.memory_space<vmem>>, %arg7: memref<1x1xf32, #tpu.memory_space<vmem>>, %arg8: memref<1x4x256xf32, #tpu.memory_space<vmem>>) attributes {dimension_semantics = [#tpu.dimension_semantics<parallel>], iteration_bounds = array<i64: 2>, scalar_prefetch = 0 : i64, scratch_operands = 0 : i64, tpu.core_type = #tpu.core_type<tc>, window_params = [{transform_indices = @transform_0, window_bounds = array<i64: 1, 4, 256>}, {pipeline_mode = #tpu.pipeline_mode<synchronous>, transform_indices = @transform_1, window_bounds = array<i64: 4, 2>}, {pipeline_mode = #tpu.pipeline_mode<synchronous>, transform_indices = @transform_2, window_bounds = array<i64: 1, 2>}, {pipeline_mode = #tpu.pipeline_mode<synchronous>, transform_indices = @transform_3, window_bounds = array<i64: 4, 2>}, {pipeline_mode = #tpu.pipeline_mode<synchronous>, transform_indices = @transform_4, window_bounds = array<i64: 4, 1>}, {pipeline_mode = #tpu.pipeline_mode<synchronous>, transform_indices = @transform_5, window_bounds = array<i64: 4, 1>}, {pipeline_mode = #tpu.pipeline_mode<synchronous>, transform_indices = @transform_6, window_bounds = array<i64: 1, 1>}, {transform_indices = @transform_7, window_bounds = array<i64: 1, 4, 256>}]} {
    %c0 = arith.constant 0 : index
    %c0_0 = arith.constant 0 : index
    %c0_1 = arith.constant 0 : index
    %0 = vector.load %arg1[%c0, %c0_0, %c0_1] : memref<1x4x256xf32, #tpu.memory_space<vmem>>, vector<1x4x256xf32>
    %1 = vector.shape_cast %0 : vector<1x4x256xf32> to vector<4x256xf32>
    %cst = arith.constant dense<0.000000e+00> : vector<4xf32>
    %2 = vector.multi_reduction <add>, %1, %cst [1] : vector<4x256xf32> to vector<4xf32>
    %3 = vector.shape_cast %2 : vector<4xf32> to vector<4x1xf32>
    %cst_2 = arith.constant 3.906250e-03 : f32
    %4 = vector.broadcast %cst_2 : f32 to vector<4x1xf32>
    %5 = arith.mulf %3, %4 : vector<4x1xf32>
    %c0_3 = arith.constant 0 : index
    %c0_4 = arith.constant 0 : index
    %6 = vector.load %arg2[%c0_3, %c0_4] : memref<4x2xf32, #tpu.memory_space<vmem>>, vector<4x2xf32>
    %7 = vector.broadcast %5 : vector<4x1xf32> to vector<4x2xf32>
    %8 = arith.mulf %7, %6 : vector<4x2xf32>
    %cst_5 = arith.constant dense<0.000000e+00> : vector<2xf32>
    %9 = vector.multi_reduction <add>, %8, %cst_5 [0] : vector<4x2xf32> to vector<2xf32>
    %10 = vector.shape_cast %9 : vector<2xf32> to vector<1x2xf32>
    %c0_6 = arith.constant 0 : index
    %c0_7 = arith.constant 0 : index
    %11 = vector.load %arg3[%c0_6, %c0_7] : memref<1x2xf32, #tpu.memory_space<vmem>>, vector<1x2xf32>
    %12 = arith.addf %10, %11 : vector<1x2xf32>
    %cst_8 = arith.constant 0.000000e+00 : f32
    %13 = vector.broadcast %cst_8 : f32 to vector<1x2xf32>
    %14 = arith.maximumf %12, %13 : vector<1x2xf32>
    %c0_9 = arith.constant 0 : index
    %c0_10 = arith.constant 0 : index
    %15 = vector.load %arg4[%c0_9, %c0_10] : memref<4x2xf32, #tpu.memory_space<vmem>>, vector<4x2xf32>
    %16 = vector.broadcast %14 : vector<1x2xf32> to vector<4x2xf32>
    %17 = arith.mulf %15, %16 : vector<4x2xf32>
    %cst_11 = arith.constant dense<0.000000e+00> : vector<4xf32>
    %18 = vector.multi_reduction <add>, %17, %cst_11 [1] : vector<4x2xf32> to vector<4xf32>
    %19 = vector.shape_cast %18 : vector<4xf32> to vector<4x1xf32>
    %c0_12 = arith.constant 0 : index
    %c0_13 = arith.constant 0 : index
    %20 = vector.load %arg5[%c0_12, %c0_13] : memref<4x1xf32, #tpu.memory_space<vmem>>, vector<4x1xf32>
    %21 = arith.addf %19, %20 : vector<4x1xf32>
    %22 = arith.negf %21 : vector<4x1xf32>
    %23 = math.exp %22 : vector<4x1xf32>
    %cst_14 = arith.constant 1.000000e+00 : f32
    %24 = vector.broadcast %cst_14 : f32 to vector<4x1xf32>
    %25 = arith.addf %24, %23 : vector<4x1xf32>
    %26 = arith.divf %24, %25 : vector<4x1xf32>
    %c0_15 = arith.constant 0 : index
    %c0_16 = arith.constant 0 : index
    %27 = vector.load %arg6[%c0_15, %c0_16] : memref<4x1xf32, #tpu.memory_space<vmem>>, vector<4x1xf32>
    %28 = vector.broadcast %27 : vector<4x1xf32> to vector<4x256xf32>
    %29 = arith.mulf %1, %28 : vector<4x256xf32>
    %cst_17 = arith.constant dense<0.000000e+00> : vector<256xf32>
    %30 = vector.multi_reduction <add>, %29, %cst_17 [0] : vector<4x256xf32> to vector<256xf32>
    %31 = vector.shape_cast %30 : vector<256xf32> to vector<1x256xf32>
    %c0_18 = arith.constant 0 : index
    %c0_19 = arith.constant 0 : index
    %32 = vector.load %arg7[%c0_18, %c0_19] : memref<1x1xf32, #tpu.memory_space<vmem>>, vector<1x1xf32>
    %33 = vector.broadcast %32 : vector<1x1xf32> to vector<1x256xf32>
    %34 = arith.addf %31, %33 : vector<1x256xf32>
    %35 = arith.negf %34 : vector<1x256xf32>
    %36 = math.exp %35 : vector<1x256xf32>
    %cst_20 = arith.constant 1.000000e+00 : f32
    %37 = vector.broadcast %cst_20 : f32 to vector<1x256xf32>
    %38 = arith.addf %37, %36 : vector<1x256xf32>
    %39 = arith.divf %37, %38 : vector<1x256xf32>
    %40 = vector.broadcast %26 : vector<4x1xf32> to vector<4x256xf32>
    %41 = vector.broadcast %39 : vector<1x256xf32> to vector<4x256xf32>
    %42 = arith.addf %40, %41 : vector<4x256xf32>
    %43 = arith.mulf %1, %42 : vector<4x256xf32>
    %c0_21 = arith.constant 0 : index
    %c0_22 = arith.constant 0 : index
    %c0_23 = arith.constant 0 : index
    %44 = vector.load %arg8[%c0_21, %c0_22, %c0_23] : memref<1x4x256xf32, #tpu.memory_space<vmem>>, vector<1x4x256xf32>
    %45 = vector.shape_cast %44 : vector<1x4x256xf32> to vector<4x256xf32>
    %46 = vector.shape_cast %43 : vector<4x256xf32> to vector<1x4x256xf32>
    tpu.vector_store %arg8[%c0_21, %c0_22, %c0_23], %46 {strides = array<i32>} : memref<1x4x256xf32, #tpu.memory_space<vmem>>, vector<1x4x256xf32>,
    return
  }
  func.func @transform_0(%arg0: i32) -> (i32, i32, i32) {
    %c0_i32 = arith.constant 0 : i32
    %c0_i32_0 = arith.constant 0 : i32
    %c0_i32_1 = arith.constant 0 : i32
    return %arg0, %c0_i32, %c0_i32_0 : i32, i32, i32
  }
  func.func @transform_1(%arg0: i32) -> (i32, i32) {
    %c0_i32 = arith.constant 0 : i32
    %c0_i32_0 = arith.constant 0 : i32
    %c0_i32_1 = arith.constant 0 : i32
    return %c0_i32, %c0_i32_0 : i32, i32
  }
  func.func @transform_2(%arg0: i32) -> (i32, i32) {
    %c0_i32 = arith.constant 0 : i32
    %c0_i32_0 = arith.constant 0 : i32
    %c0_i32_1 = arith.constant 0 : i32
    return %c0_i32, %c0_i32_0 : i32, i32
  }
  func.func @transform_3(%arg0: i32) -> (i32, i32) {
    %c0_i32 = arith.constant 0 : i32
    %c0_i32_0 = arith.constant 0 : i32
    %c0_i32_1 = arith.constant 0 : i32
    return %c0_i32, %c0_i32_0 : i32, i32
  }
  func.func @transform_4(%arg0: i32) -> (i32, i32) {
    %c0_i32 = arith.constant 0 : i32
    %c0_i32_0 = arith.constant 0 : i32
    %c0_i32_1 = arith.constant 0 : i32
    return %c0_i32, %c0_i32_0 : i32, i32
  }
  func.func @transform_5(%arg0: i32) -> (i32, i32) {
    %c0_i32 = arith.constant 0 : i32
    %c0_i32_0 = arith.constant 0 : i32
    %c0_i32_1 = arith.constant 0 : i32
    return %c0_i32, %c0_i32_0 : i32, i32
  }
  func.func @transform_6(%arg0: i32) -> (i32, i32) {
    %c0_i32 = arith.constant 0 : i32
    %c0_i32_0 = arith.constant 0 : i32
    %c0_i32_1 = arith.constant 0 : i32
    return %c0_i32, %c0_i32_0 : i32, i32
  }
  func.func @transform_7(%arg0: i32) -> (i32, i32, i32) {
    %c0_i32 = arith.constant 0 : i32
    %c0_i32_0 = arith.constant 0 : i32
    %c0_i32_1 = arith.constant 0 : i32
    return %arg0, %c0_i32, %c0_i32_0 : i32, i32, i32
  }
}

</mosaic_0001>

<bundles_post_ra>
// kernel: tpu_custom_call.1
= control target key start
LH: loop header
LB: loop body
LE: loop exit
PB: predicated region body
PF: predicated region fallthrough
CT: control target
= control target key end

     0   :  { %s915_s0 = inlined_call_operand.hbm [shape: f32[2,4,256], index: 0, kind: input, shape index: {}]   ;;  %s916_s1 = inlined_call_operand.vmem [shape: f32[4,2], index: 1, kind: input, shape index: {}]   ;;  %s917_s2 = inlined_call_operand.vmem [shape: f32[1,2], index: 2, kind: input, shape index: {}]   ;;  %s918_s3 = inlined_call_operand.vmem [shape: f32[4,2], index: 3, kind: input, shape index: {}]   ;;  %s919_s4 = inlined_call_operand.vmem [shape: f32[4,1], index: 4, kind: input, shape index: {}]   ;;  %s920_s5 = inlined_call_operand.vmem [shape: f32[4,1], index: 5, kind: input, shape index: {}]   ;;  %s921_s6 = inlined_call_operand.<no memory space> [shape: f32[1,1], index: 6, kind: input, shape index: {}]   ;;  %s922_s7 = inlined_call_operand.hbm [shape: f32[2,4,256], index: 7, kind: output, shape index: {}]  }
   0x1   :  { %v12_v0 = vstv %s921_s6 }
   0x2   :  { %13 = vst [vmem:[#allocation2] sm:$0x1] %v12_v0 }
   0x3   :  { %14 = vsyncpa [#allocation4], 0 }
   0x4   :  { %16 = vsyncpa [#allocation4 + $0x1], 0 }
   0x5   :  { %17 = vsyncpa [#allocation5], 0 }
   0x6   :  { %19 = vsyncpa [#allocation5 + $0x1], 0  ;;  %s757_s26 = smov 0   ;;  %s759_s27 = smov 0  }
   0x7   :  { %s761_s28 = smov 0   ;;  %s763_s29 = smov 0  }
   0x8 LB: > { %s778_s6 = sadd.s32 4294967295, %s710_s29   ;;  %s532_s30 = sadd.s32 4294967294, %s710_s29   ;;  %s710_s29 = sphi %s763_s29, %s932_s29   ;;  %s706_s28 = sphi %s761_s28, %s931_s28   ;;  %s702_s27 = sphi %s759_s27, %s930_s27   ;;  %s698_s26 = sphi %s757_s26, %s929_s26  }
   0x9   : > { %s782_s8 = sadd.s32 1, %s710_s29   ;;  %s32_s9 = sadd.s32 1, %s706_s28 }
   0xa   : > { %s29_s10 = ssub.s32 %s710_s29, %s782_s8  ;;  %p39_p0 = scmp.ne.s32.totalorder %s706_s28, %s702_s27 }
   0xb   : > { %p30_p1 = scmp.eq.s32.totalorder %s29_s10, 0  ;;  %p40_p2 = scmp.eq.s32.totalorder %s710_s29, 0 }
   0xc   : > { %p45_p3 = scmp.ne.s32.totalorder %s702_s27, %s698_s26  ;;  %p46_p4 = scmp.eq.s32.totalorder %s778_s6, 0 }
   0xd   : > { %s794_s11 = scalar_select %p30_p1, %s706_s28, %s32_s9  }
   0xe   : > { %p796_p5 = por %p40_p2, %p39_p0  ;;  %p800_p6 = por %p46_p4, %p45_p3 }
   0xf   : > { %p195_p7 = scmp.eq.s32.totalorder %s778_s6, 1  ;;  %p201_p8 = scmp.eq.s32.totalorder %s532_s30, 1 }
  0x10   : > { %p563_p10 = scmp.lt.s32.totalorder %s710_s29, 2  ;;  %s239_s16 = sand.u32 1, %s706_s28  }
  0x11   : > { %p807_p11 = por %p195_p7, %p39_p0  ;;  %p811_p12 = por %p201_p8, %p45_p3 }
  0x12   : > { %s549_s17 = sshll.u32 %s710_s29, 3  ;;  %s535_s18 = sshll.u32 %s239_s16, 3 }
  0x13   : > { %s248_s21 = scalar_lea.hbm %s915_s0, %s549_s17  ;;  %s243_s23 = scalar_lea.vmem [#allocation3], %s535_s18 }
  0x14   : > { %s250_s22 = sshll.u32 %s248_s21, 4  ;;  %s252_s24 = sshll.u32 %s243_s23, 4  ;;  %s251_s22 = int_to_ptr.hbm [resolvable:$true] %s250_s22  ;;  %s253_s24 = int_to_ptr.vmem [resolvable:$true] %s252_s24 }
  0x15   : > { %p822_p13 = pnand %p563_p10, %p796_p5  ;;  %p538_p0 = scmp.ge.s32.totalorder %s710_s29, 1 }
  0x16   : > { %p257_p1 = scmp.lt.s32.totalorder %s710_s29, 3  ;;  %s240_s30 = scalar_lea.sflag [#allocation4], %s239_s16 }
  0x17   : > { %s614_s9 = sshra.s32 %s251_s22, 4  ;;  %p618_p3 = pneg %p822_p13  ;;  %s615_s9 = int_to_ptr.hbm [resolvable:$true] %s614_s9 }
  0x18   : > { %s616_s10 = scalar_lea.hbm %s615_s9, 8  ;;  %s621_s12 = scalar_lea.hbm %s915_s0, 16 }
  0x19   : > { %p617_p2 = scmp.ne.s32.totalorder %s615_s9, %s616_s10  ;;  %p622_p5 = scmp.lt.s32.totalorder %s615_s9, %s915_s0 }
  0x1a   : > { %p623_p8 = scmp.lt.s32.totalorder %s621_s12, %s616_s10 }
  0x1b   : > { %p619_p4 = pnand %p618_p3, %p617_p2 }
  0x1c   : > { %p624_p10 = por %p623_p8, %p622_p5 }
  0x1d   : > { %p620_p7 = pneg %p619_p4 }
  0x1f   : > { %p625_p9 = pnand %p624_p10, %p620_p7 }
  0x21   : > { %628 = shalt.err (!%p625_p9)
}
  0x22   : > { %558 = dma.hbm_to_vmem [thread:$0]  (!%p822_p13), %s251_s22, 128, %s253_s24, %s240_s30  }
  0x23   : > { %p258_p2 = pnand %p538_p0, %p257_p1 }
  0x24   : > { %s843_s16 = sand.u32 (!%p258_p2), 1, %s702_s27  }
  0x25   : > { %261 = sbr.rel (%p258_p2) target bundleno = 444 (0x1bc), region = 48  ;;  %s539_s21 = sshll.u32 (!%p258_p2), %s843_s16, 3 }
  0x26   : > { %s264_s23 = scalar_lea.sflag (!%p258_p2), [#allocation4], %s843_s16  ;;  %s267_s9 = scalar_lea.vmem (!%p258_p2), [#allocation3], %s539_s21 }
  0x2a   : > { %689 = dma.done.wait (%p800_p6), %s264_s23, 128  }
  0x2b   : > { %691 = vsyncadd (%p800_p6), %s264_s23, 4294967168  ;;  %v853_v1 = vld [vmem:[%s267_s9] sm:$0xff]  ;;  %vm306_vm0 = vcmask 1043456   ;;  %v353_v7 = vld [vmem:[%s920_s5] sm:$0xf]  ;;  %v712_v8 = vmov 0  }
  0x2c   : > { %301 = vst [vmem:[#allocation1] ss:$2 sm:$0xff] %v853_v1  ;;  %599 = vset.pattern.permute.xlu1 %v712_v8  ;;  %600 = vset.pattern.permute.xlu2 %v712_v8  ;;  %v313_v9 = vld [vmem:[%s916_s1] sm:$0xf]  ;;  %vm315_vm1 = vcmask 11264   ;;  %s550_s20 = sshll.u32 %s778_s6, 3 }
  0x2d   : > { %356 = vperm.xlu1 %599, %v353_v7   ;;  %601 = vset.pattern.permute.xlu0 %v712_v8  ;;  %v384_v12 = vld [vmem:[#allocation2] sm:$0x1]  ;;  %v323_v20 = vld [vmem:[%s917_s2] sm:$0x1]  ;;  %v713_v28 = vmov 839922192   ;;  %s457_s22 = scalar_lea.hbm %s922_s7, %s550_s20 }
  0x2e   : > { %v326_v24 = vld [vmem:[%s918_s3] sm:$0xf]  ;;  %v359_v29 = vunpack.c.l.s4 %v713_v28  ;;  %s298_s24 = scalar_lea.vmem [#allocation6], %s539_s21  ;;  %s461_s25 = sshll.u32 %s457_s22, 4  ;;  %s462_s25 = int_to_ptr.hbm [resolvable:$true] %s461_s25 }
  0x2f   : > { %v332_v34 = vld [vmem:[%s919_s4] sm:$0xf]  ;;  %s459_s13 = sshll.u32 %s298_s24, 4  ;;  %s446_s6 = scalar_lea.sflag [#allocation5], %s843_s16  ;;  %s460_s13 = int_to_ptr.vmem [resolvable:$true] %s459_s13 }
  0x30   : > { %v360_v31 = vunpack.c.0.s8 %v359_v29  ;;  %s658_s30 = sshra.s32 %s462_s25, 4  ;;  %s664_s21 = scalar_lea.hbm %s922_s7, 16  ;;  %s659_s30 = int_to_ptr.hbm [resolvable:$true] %s658_s30 }
  0x31   : > { %s660_s10 = scalar_lea.hbm %s659_s30, 8  ;;  %p665_p0 = scmp.lt.s32.totalorder %s659_s30, %s922_s7 }
  0x32   : > { %p661_p6 = scmp.ne.s32.totalorder %s659_s30, %s660_s10  ;;  %p666_p1 = scmp.lt.s32.totalorder %s664_s21, %s660_s10 }
  0x33   : > { %v302_v2 = vld.sshfl [vmem:[#allocation1] sm:$0xff pattern:$0x75316420]  ;;  %v303_v3 = vld.sshfl [vmem:[#allocation1 + $0x8] sm:$0xff pattern:$0x75316420] }
  0x34   : > { %v307_v4 = vsel %vm306_vm0, %v302_v2, 0.0  ;;  %v308_v5 = vsel %vm306_vm0, %v303_v3, 0.0  ;;  %p662_p9 = pnand %p661_p6, %p807_p11  ;;  %p667_p3 = por %p666_p1, %p665_p0 }
  0x35   : > { %v309_v6 = vadd.f32 %v308_v5, %v307_v4  ;;  %387 = vperm.xlu1 %599, %v384_v12  }
  0x36   : > { %p663_p13 = pneg %p662_p9 }
  0x37   : > { %310 = vadd.xlane.f32.xlu0 %v309_v6 }
  0x38   : > { %p668_p4 = pnand %p667_p3, %p663_p13 }
  0x9f   : > { %v357_v30 = vpop.permute.xlu1 %356 }
  0xa0   : > { %v361_v32 = vperm.slane %v357_v30, %v360_v31 }
  0xa2   : > { %v363_v33 = vmul.f32 %v361_v32, %v853_v1 }
  0xa4   : > { %365 = vst [vmem:[#allocation1] ss:$2 sm:$0xff] %v363_v33 }
  0xa7   : > { %v388_v63 = vpop.permute.xlu1 %387 }
  0xa8   : > { %v390_v3 = vperm.slane %v388_v63, 0 }
  0xaa   : > { %v311_v10 = vpop.xlane.xlu0 %310 }
  0xab   : > { %v312_v11 = vmul.f32 0.00390625, %v311_v10  ;;  %v367_v50 = vld.sshfl [vmem:[#allocation1 + $0x8] sm:$0xff pattern:$0x75316420] }
  0xac   : > { %v366_v51 = vld.sshfl [vmem:[#allocation1] sm:$0xff pattern:$0x75316420]  ;;  %v377_v52 = vsel %vm306_vm0, %v367_v50, 0.0 }
  0xad   : > { %v314_v13 = vmul.f32 %v313_v9, %v312_v11  ;;  %v370_v53 = vsel %vm306_vm0, %v366_v51, 0.0  ;;  %v378_v54 = vrot.slane %v377_v52, 4 }
  0xae   : > { %v371_v55 = vrot.slane %v370_v53, 4 }
  0xaf   : > { %v316_v14 = vsel %vm315_vm1, %v314_v13, 0.0  ;;  %v379_v56 = vadd.f32 %v378_v54, %v377_v52 }
  0xb0   : > { %v317_v15 = vrot.slane %v316_v14, 4  ;;  %v372_v57 = vadd.f32 %v371_v55, %v370_v53 }
  0xb1   : > { %v380_v58 = vrot.slane %v379_v56, 2 }
  0xb2   : > { %v318_v16 = vadd.f32 %v317_v15, %v316_v14  ;;  %v373_v59 = vrot.slane %v372_v57, 2 }
  0xb3   : > { %v381_v60 = vadd.f32 %v380_v58, %v379_v56 }
  0xb4   : > { %v319_v17 = vrot.slane %v318_v16, 2  ;;  %v374_v61 = vadd.f32 %v373_v59, %v372_v57 }
  0xb5   : > { %v382_v62 = vrot.slane %v381_v60, 1 }
  0xb6   : > { %v320_v18 = vadd.f32 %v319_v17, %v318_v16  ;;  %v375_v0 = vrot.slane %v374_v61, 1 }
  0xb7   : > { %v383_v2 = vadd.f32 %v382_v62, %v381_v60 }
  0xb8   : > { %v321_v19 = vrot.slane %v320_v18, 1  ;;  %v376_v4 = vadd.f32 %v375_v0, %v374_v61 }
  0xb9   : > { %v392_v5 = vadd.f32 %v390_v3, %v383_v2 }
  0xba   : > { %v322_v21 = vadd.f32 %v321_v19, %v320_v18  ;;  %v391_v6 = vadd.f32 %v390_v3, %v376_v4 }
  0xbb   : > { %v543_v7 = vmul.f32 -1.442695, %v392_v5 }
  0xbc   : > { %v324_v22 = vadd.f32 %v323_v20, %v322_v21  ;;  %v542_v8 = vmul.f32 -1.442695, %v391_v6 }
  0xbe   : > { %v325_v23 = vmax.f32 %v324_v22, 0.0 }
  0xc0   : > { %v327_v25 = vperm.slane %v325_v23, 0 }
  0xc2   : > { %v328_v26 = vmul.f32 %v327_v25, %v326_v24 }
  0xc4   : > { %v329_v27 = vsel %vm315_vm1, %v328_v26, 0.0 }
  0xc5   : > { %330 = vadd.xlane.f32.xlu0 %v329_v27 }
 0x138   : > { %v331_v35 = vpop.xlane.xlu0 %330 }
 0x139   : > { %v333_v36 = vadd.f32 %v332_v34, %v331_v35 }
 0x13b   : > { %v541_v37 = vmul.f32 -1.442695, %v333_v36 }
 0x13d   : > { %602 = vpow2.f32 %v541_v37 }
 0x143   : > { %v603_v38 = vpop.eup %602 }
 0x144   : > { %v337_v39 = vadd.f32 1.0, %v603_v38 }
 0x146   : > { %604 = vrcp.f32 %v337_v39  ;;  %v349_v43 = vand.u32 2147483648, %v337_v39  ;;  %v347_v45 = vand.u32 2147483647, %v337_v39  ;;  %vm343_vm3 = vweird.f32 %v337_v39 }
 0x147   : > { %606 = vpow2.f32 %v543_v7 }
 0x148   : > { %v350_v47 = vor.u32 1.1754944e-38, %v349_v43  ;;  %vm348_vm5 = vcmp.eq.f32.partialorder %v347_v45, 8.507059e+37  ;;  %608 = vpow2.f32 %v542_v8 }
 0x14c   : > { %v605_v40 = vpop.eup %604 }
 0x14d   : > { %v339_v41 = vmul.f32 %v605_v40, %v337_v39  ;;  %vm344_vm2 = vweird.f32 %v605_v40  ;;  %v607_v9 = vpop.eup %606 }
 0x14e   : > { %vm345_vm4 = vmor %vm343_vm3, %vm344_vm2  ;;  %v609_v10 = vpop.eup %608  ;;  %v400_v11 = vadd.f32 1.0, %v607_v9 }
 0x14f   : > { %v340_v42 = vsub.f32 1.0, %v339_v41  ;;  %v399_v12 = vadd.f32 1.0, %v609_v10 }
 0x150   : > { %610 = vrcp.f32 %v400_v11  ;;  %vm421_vm6 = vweird.f32 %v400_v11  ;;  %v427_v21 = vand.u32 2147483648, %v400_v11  ;;  %v425_v23 = vand.u32 2147483647, %v400_v11 }
 0x151   : > { %v341_v44 = vmul.f32 %v605_v40, %v340_v42  ;;  %612 = vrcp.f32 %v399_v12  ;;  %vm406_vm8 = vweird.f32 %v399_v12  ;;  %v412_v24 = vand.u32 2147483648, %v399_v12 }
 0x152   : > { %v410_v26 = vand.u32 2147483647, %v399_v12  ;;  %v428_v27 = vor.u32 1.1754944e-38, %v427_v21  ;;  %vm426_vm12 = vcmp.eq.f32.partialorder %v425_v23, 8.507059e+37 }
 0x153   : > { %v342_v46 = vadd.f32 %v605_v40, %v341_v44  ;;  %v413_v29 = vor.u32 1.1754944e-38, %v412_v24 }
 0x154   : > { %vm411_vm13 = vcmp.eq.f32.partialorder %v410_v26, 8.507059e+37 }
 0x155   : > { %v346_v48 = vsel %vm345_vm4, %v605_v40, %v342_v46 }
 0x156   : > { %v351_v49 = vsel %vm348_vm5, %v350_v47, %v346_v48  ;;  %v611_v13 = vpop.eup %610 }
 0x157   : > { %433 = vperm.xlu2 %600, %v351_v49   ;;  %v613_v14 = vpop.eup %612  ;;  %v417_v15 = vmul.f32 %v611_v13, %v400_v11  ;;  %vm422_vm7 = vweird.f32 %v611_v13 }
 0x158   : > { %v402_v16 = vmul.f32 %v613_v14, %v399_v12  ;;  %vm407_vm9 = vweird.f32 %v613_v14  ;;  %vm423_vm10 = vmor %vm421_vm6, %vm422_vm7 }
 0x159   : > { %v418_v17 = vsub.f32 1.0, %v417_v15  ;;  %vm408_vm11 = vmor %vm406_vm8, %vm407_vm9 }
 0x15a   : > { %v403_v18 = vsub.f32 1.0, %v402_v16 }
 0x15b   : > { %v419_v19 = vmul.f32 %v611_v13, %v418_v17 }
 0x15c   : > { %v404_v20 = vmul.f32 %v613_v14, %v403_v18 }
 0x15d   : > { %v420_v22 = vadd.f32 %v611_v13, %v419_v19 }
 0x15e   : > { %v405_v25 = vadd.f32 %v613_v14, %v404_v20 }
 0x15f   : > { %v424_v28 = vsel %vm423_vm10, %v611_v13, %v420_v22 }
 0x160   : > { %v409_v30 = vsel %vm408_vm11, %v613_v14, %v405_v25  ;;  %v429_v31 = vsel %vm426_vm12, %v428_v27, %v424_v28 }
 0x161   : > { %v414_v34 = vsel %vm411_vm13, %v413_v29, %v409_v30 }
 0x1b1   : > { %v434_v32 = vpop.permute.xlu2 %433 }
 0x1b2   : > { %v437_v33 = vadd.f32 %v434_v32, %v429_v31  ;;  %v436_v35 = vadd.f32 %v434_v32, %v414_v34 }
 0x1b4   : > { %v440_v36 = vrot.slane %v437_v33, 4 }
 0x1b6   : > { %v441_v37 = vsel %vm306_vm0, %v436_v35, %v440_v36 }
 0x1b7   : > { %v443_v38 = vmul.f32 %v441_v37, %v853_v1 }
 0x1b9   : > { %444 = vst [vmem:[%s298_s24] sm:$0xff] %v443_v38 }
 0x1ba   : > { %671 = shalt.err (!%p668_p4)
}
 0x1bb   : > { %553 = dma.vmem_to_hbm [thread:$0]  (%p807_p11), %s460_s13, 128, %s462_s25, %s446_s6  }
 0x1bc PF: > { %s473_s16 = sand.u32 1, %s698_s26   ;;  %p928_p7 = scmp.ge.s32.totalorder %s710_s29, 2 }
 0x1bd   : > { %s474_s20 = scalar_lea.sflag [#allocation5], %s473_s16 }
 0x1be   : > { %p560_p5 = pnand %p928_p7, %p811_p12 }
 0x1c0   : > { %p561_p8 = pneg %p560_p5 }
 0x1c2   : > { %693 = dma.done.wait (%p561_p8), %s474_s20, 128  }
 0x1c3   : > { %695 = vsyncadd (%p561_p8), %s474_s20, 4294967168  ;;  %p22_p10 = scmp.ge.s32.totalorder %s782_s8, 4   ;;  %s929_s26 = smov %s702_s27 }
 0x1c4   : > { %s930_s27 = smov %s706_s28  ;;  %s931_s28 = smov %s794_s11 }
 0x1c5   : > { %s932_s29 = smov %s782_s8  ;;  %24 = sbr.rel (!%p22_p10) target bundleno = 8 (0x8), region = 93 }
 0x1ca   :  { %480 = vsyncpa [#allocation4], 1 }
 0x1cb   :  { %482 = vsyncpa [#allocation4 + $0x1], 1 }
 0x1cc   :  { %483 = vsyncpa [#allocation5], 1 }
 0x1cd   :  { %485 = vsyncpa [#allocation5 + $0x1], 1 }

</bundles_post_ra>
